<compile_context>
chip_gen: v7x
topology: tpu7x:2x2x1
jax: 0.10.0
libtpu: 0.0.40
codegen_flags: <defaults>
</compile_context>

<pallas_src>
import functools
import math

import jax
import jax.numpy as jnp
from jax.experimental import pallas as pl
from jax.experimental.pallas import tpu as pltpu


def lstm_binary_kernel(x_ref, wih_ref, whh_ref, b_ref, wout_ref, bout_ref,
                       out_ref, *, seq_len, batch_padded):
    """Whole LSTM recurrence + output head in one kernel (single grid point).

    x_ref holds the time-major input flattened to (seq_len * batch_padded,
    input_size) so the hoisted input projection is a single 2-D MXU matmul.
    Weight layout (right-multiply), pre-folded with the 0.5 sigmoid-as-tanh
    scale on the i/f/o gate columns:
      W_ih (D, 4H), W_hh (H, 4H), b (1, 4H) with PyTorch gate order [i,f,g,o];
      W_out (H, A), b_out (1, A).
    """
    T, BP = seq_len, batch_padded
    H = whh_ref.shape[0]

    whh = whh_ref[...]

    # Hoisted, time-parallel input projection (+ bias): no dependence on h.
    xw = jnp.dot(x_ref[...], wih_ref[...],
                 preferred_element_type=jnp.float32) + b_ref[...]   # (T*BP, 4H)

    h = jnp.zeros((BP, H), jnp.float32)
    c = jnp.zeros((BP, H), jnp.float32)

    # --- recurrence: fully unrolled (T is static) -----------------------------
    # BP == 8, so every slice offset t*BP is a whole f32 sublane group and the
    # (BP, 4H) = (8, 128) gates tensor is exactly one vreg per step.
    for t in range(T):
        gates = xw[t * BP:(t + 1) * BP, :] + jnp.dot(
            h, whh, preferred_element_type=jnp.float32)             # (BP, 4H)
        # Weights were pre-scaled by 0.5 on the i/f/o columns, so one
        # full-width tanh over the whole gates vreg gives:
        #   0.5*tanh(0.5*z)+0.5 == sigmoid(z)   for i/f/o, tanh(z) for g.
        tg = jnp.tanh(gates)                     # single full-width EUP op
        i = 0.5 * tg[:, 0 * H:1 * H] + 0.5       # == sigmoid(original i)
        f = 0.5 * tg[:, 1 * H:2 * H] + 0.5       # == sigmoid(original f)
        g = tg[:, 2 * H:3 * H]                   # == tanh(original g)
        o = 0.5 * tg[:, 3 * H:4 * H] + 0.5       # == sigmoid(original o)
        c = f * c + i * g
        h = o * jnp.tanh(c)

    # --- output head ----------------------------------------------------------
    logits = jnp.dot(h, wout_ref[...],
                     preferred_element_type=jnp.float32) + bout_ref[...]
    out_ref[...] = jax.nn.sigmoid(logits)         # (BP, num_actors)


def fold_gate_scale(params):
    """One-time parameter prep: fold the 0.5 sigmoid-as-tanh pre-scale into the
    i/f/o gate columns of the LSTM weights so the kernel has no per-call setup.
    Call once at init (not per forward call)."""
    wih, whh, b, wout, bout = params
    H = whh.shape[0]
    col = jnp.arange(4 * H)
    is_g_gate = (col >= 2 * H) & (col < 3 * H)          # tanh gate keeps scale 1
    scale = jnp.where(is_g_gate, 1.0, 0.5).astype(jnp.float32)
    return wih * scale, whh * scale, b * scale, wout, bout


def lstm_binary_forward(x, folded_params, pred_len=1):
    """x: (batch, input_size, seq_len) -- same layout as the PyTorch module input.

    `folded_params` must come from fold_gate_scale(init_params(...)).
    NOTE: per-call launch overhead dominates the ~1-2 us of compute at these
    shapes; stack independent sequences along batch before calling if this
    forward runs many times.
    """
    wih, whh, b, wout, bout = folded_params
    B, D, T = x.shape
    A = wout.shape[1]

    # Pad batch to a full f32 sublane group (8 rows). Padded rows are zeros;
    # their outputs are discarded below.
    BP = max(8, ((B + 7) // 8) * 8)

    # (batch, input_size, seq_len) -> (seq_len, batch_padded, input_size)
    # time-major, flattened so the in-kernel input projection is one 2-D matmul
    # and each timestep's rows start on a sublane-group boundary.
    x_tbd = jnp.transpose(x, (2, 0, 1)).astype(jnp.float32)        # (T, B, D)
    x_pad = jnp.zeros((T, BP, D), jnp.float32).at[:, :B, :].set(x_tbd)
    x_2d = x_pad.reshape(T * BP, D)

    kernel = functools.partial(lstm_binary_kernel, seq_len=T, batch_padded=BP)
    out = pl.pallas_call(
        kernel,
        out_shape=jax.ShapeDtypeStruct((BP, A), jnp.float32),
        in_specs=[
            pl.BlockSpec(memory_space=pltpu.MemorySpace.VMEM),  # x (T*BP, D)
            pl.BlockSpec(memory_space=pltpu.MemorySpace.VMEM),  # W_ih (folded)
            pl.BlockSpec(memory_space=pltpu.MemorySpace.VMEM),  # W_hh (folded)
            pl.BlockSpec(memory_space=pltpu.MemorySpace.VMEM),  # b    (folded)
            pl.BlockSpec(memory_space=pltpu.MemorySpace.VMEM),  # W_out
            pl.BlockSpec(memory_space=pltpu.MemorySpace.VMEM),  # b_out
        ],
        out_specs=pl.BlockSpec(memory_space=pltpu.MemorySpace.VMEM),
    )(x_2d, wih, whh, b, wout, bout)

    # Drop the padded rows; matches PyTorch out.view(batch, num_actors, pred_len)
    # with pred_len == 1.
    return out[:B].reshape(B, A, pred_len)


def init_params(key, input_size, hidden_dim, num_actors):
    """Deterministic synthetic init mirroring the PyTorch module's shapes."""
    k1, k2, k3, k4, k5 = jax.random.split(key, 5)
    lstm_bound = 1.0 / math.sqrt(hidden_dim)
    # PyTorch stores (4H, in) / (4H, H); we keep transposed right-multiply form.
    wih = jax.random.uniform(k1, (input_size, 4 * hidden_dim), jnp.float32,
                             -lstm_bound, lstm_bound)
    whh = jax.random.uniform(k2, (hidden_dim, 4 * hidden_dim), jnp.float32,
                             -lstm_bound, lstm_bound)
    b = jax.random.uniform(k3, (1, 4 * hidden_dim), jnp.float32,
                           -lstm_bound, lstm_bound)  # b_ih + b_hh combined
    kaiming_bound = math.sqrt(2.0) * math.sqrt(3.0 / hidden_dim)
    wout = jax.random.uniform(k4, (hidden_dim, num_actors), jnp.float32,
                              -kaiming_bound, kaiming_bound)
    bout = jnp.zeros((1, num_actors), jnp.float32)   # init.constant_(bias, 0)
    del k5
    return wih, whh, b, wout, bout


def reference_forward(x, params):
    """Pure-JAX reference of the same forward pass (for a correctness check).

    Takes the UNFOLDED params (as produced by init_params)."""
    wih, whh, b, wout, bout = params
    H = whh.shape[0]
    x_tbd = jnp.transpose(x, (2, 0, 1)).astype(jnp.float32)
    B = x_tbd.shape[1]
    h = jnp.zeros((B, H), jnp.float32)
    c = jnp.zeros((B, H), jnp.float32)
    for t in range(x_tbd.shape[0]):
        gates = x_tbd[t] @ wih + h @ whh + b
        i = jax.nn.sigmoid(gates[:, 0 * H:1 * H])
        f = jax.nn.sigmoid(gates[:, 1 * H:2 * H])
        g = jnp.tanh(gates[:, 2 * H:3 * H])
        o = jax.nn.sigmoid(gates[:, 3 * H:4 * H])
        c = f * c + i * g
        h = o * jnp.tanh(c)
    out = jax.nn.sigmoid(h @ wout + bout)
    return out.reshape(B, -1, 1)


if __name__ == "__main__":
    # Small config consistent with the module:
    #   num_actors = 4, len(phases) = 3  -> input_size = 4 + 3 + 2 = 9
    #   seq_len = 8, hidden_dim = 32, pred_len = 1, batch = 2
    batch = 2
    num_actors = 4
    num_phases = 3
    input_size = num_actors + num_phases + 2
    seq_len = 8
    hidden_dim = 32

    key = jax.random.PRNGKey(0)
    kx, kp = jax.random.split(key)
    x = jax.random.normal(kx, (batch, input_size, seq_len), jnp.float32)
    params = init_params(kp, input_size, hidden_dim, num_actors)
    kernel_params = fold_gate_scale(params)     # one-time weight prep

    out = lstm_binary_forward(x, kernel_params)
    out = jax.block_until_ready(out)

    ref = reference_forward(x, params)
    assert out.shape == (batch, num_actors, 1)
    assert jnp.allclose(out, ref, atol=1e-5, rtol=1e-5)

    print("KERNEL_OK")
</pallas_src>

<mosaic_0001>
module attributes {stable_mosaic.version = 11 : i64} {
  func.func @lstm_binary_kernel(%arg0: memref<64x9xf32, #tpu.memory_space<vmem>>, %arg1: memref<9x128xf32, #tpu.memory_space<vmem>>, %arg2: memref<32x128xf32, #tpu.memory_space<vmem>>, %arg3: memref<1x128xf32, #tpu.memory_space<vmem>>, %arg4: memref<32x4xf32, #tpu.memory_space<vmem>>, %arg5: memref<1x4xf32, #tpu.memory_space<vmem>>, %arg6: memref<8x4xf32, #tpu.memory_space<vmem>>) attributes {dimension_semantics = [], scalar_prefetch = 0 : i64, scratch_operands = 0 : i64, tpu.core_type = #tpu.core_type<tc>} {
    %c0 = arith.constant 0 : index
    %c0_0 = arith.constant 0 : index
    %0 = vector.load %arg2[%c0, %c0_0] : memref<32x128xf32, #tpu.memory_space<vmem>>, vector<32x128xf32>
    %c0_1 = arith.constant 0 : index
    %c0_2 = arith.constant 0 : index
    %1 = vector.load %arg0[%c0_1, %c0_2] : memref<64x9xf32, #tpu.memory_space<vmem>>, vector<64x9xf32>
    %c0_3 = arith.constant 0 : index
    %c0_4 = arith.constant 0 : index
    %2 = vector.load %arg1[%c0_3, %c0_4] : memref<9x128xf32, #tpu.memory_space<vmem>>, vector<9x128xf32>
    %cst = arith.constant dense<0.000000e+00> : vector<64x128xf32>
    %3 = tpu.matmul %1, %2, %cst {dimension_numbers = #tpu.dot_dimension_numbers<[1], [0], [0], [1], [0, 0, 1, 1], [], []>} : vector<64x9xf32>, vector<9x128xf32>, vector<64x128xf32> -> vector<64x128xf32>
    %c0_5 = arith.constant 0 : index
    %c0_6 = arith.constant 0 : index
    %4 = vector.load %arg3[%c0_5, %c0_6] : memref<1x128xf32, #tpu.memory_space<vmem>>, vector<1x128xf32>
    %5 = vector.broadcast %4 : vector<1x128xf32> to vector<64x128xf32>
    %6 = arith.addf %3, %5 : vector<64x128xf32>
    %cst_7 = arith.constant 0.000000e+00 : f32
    %7 = vector.broadcast %cst_7 : f32 to vector<8x32xf32>
    %cst_8 = arith.constant 0.000000e+00 : f32
    %8 = vector.broadcast %cst_8 : f32 to vector<8x32xf32>
    %9 = vector.extract_strided_slice %6 {offsets = [0, 0], sizes = [8, 128], strides = [1, 1]} : vector<64x128xf32> to vector<8x128xf32>
    %cst_9 = arith.constant dense<0.000000e+00> : vector<8x128xf32>
    %10 = tpu.matmul %7, %0, %cst_9 {dimension_numbers = #tpu.dot_dimension_numbers<[1], [0], [0], [1], [0, 0, 1, 1], [], []>} : vector<8x32xf32>, vector<32x128xf32>, vector<8x128xf32> -> vector<8x128xf32>
    %11 = arith.addf %9, %10 : vector<8x128xf32>
    %12 = math.tanh %11 : vector<8x128xf32>
    %13 = vector.extract_strided_slice %12 {offsets = [0, 0], sizes = [8, 32], strides = [1, 1]} : vector<8x128xf32> to vector<8x32xf32>
    %cst_10 = arith.constant 5.000000e-01 : f32
    %14 = vector.broadcast %cst_10 : f32 to vector<8x32xf32>
    %15 = arith.mulf %14, %13 : vector<8x32xf32>
    %cst_11 = arith.constant 5.000000e-01 : f32
    %16 = vector.broadcast %cst_11 : f32 to vector<8x32xf32>
    %17 = arith.addf %15, %16 : vector<8x32xf32>
    %18 = vector.extract_strided_slice %12 {offsets = [0, 32], sizes = [8, 32], strides = [1, 1]} : vector<8x128xf32> to vector<8x32xf32>
    %cst_12 = arith.constant 5.000000e-01 : f32
    %19 = vector.broadcast %cst_12 : f32 to vector<8x32xf32>
    %20 = arith.mulf %19, %18 : vector<8x32xf32>
    %cst_13 = arith.constant 5.000000e-01 : f32
    %21 = vector.broadcast %cst_13 : f32 to vector<8x32xf32>
    %22 = arith.addf %20, %21 : vector<8x32xf32>
    %23 = vector.extract_strided_slice %12 {offsets = [0, 64], sizes = [8, 32], strides = [1, 1]} : vector<8x128xf32> to vector<8x32xf32>
    %24 = vector.extract_strided_slice %12 {offsets = [0, 96], sizes = [8, 32], strides = [1, 1]} : vector<8x128xf32> to vector<8x32xf32>
    %cst_14 = arith.constant 5.000000e-01 : f32
    %25 = vector.broadcast %cst_14 : f32 to vector<8x32xf32>
    %26 = arith.mulf %25, %24 : vector<8x32xf32>
    %cst_15 = arith.constant 5.000000e-01 : f32
    %27 = vector.broadcast %cst_15 : f32 to vector<8x32xf32>
    %28 = arith.addf %26, %27 : vector<8x32xf32>
    %29 = arith.mulf %22, %8 : vector<8x32xf32>
    %30 = arith.mulf %17, %23 : vector<8x32xf32>
    %31 = arith.addf %29, %30 : vector<8x32xf32>
    %32 = math.tanh %31 : vector<8x32xf32>
    %33 = arith.mulf %28, %32 : vector<8x32xf32>
    %34 = vector.extract_strided_slice %6 {offsets = [8, 0], sizes = [8, 128], strides = [1, 1]} : vector<64x128xf32> to vector<8x128xf32>
    %cst_16 = arith.constant dense<0.000000e+00> : vector<8x128xf32>
    %35 = tpu.matmul %33, %0, %cst_16 {dimension_numbers = #tpu.dot_dimension_numbers<[1], [0], [0], [1], [0, 0, 1, 1], [], []>} : vector<8x32xf32>, vector<32x128xf32>, vector<8x128xf32> -> vector<8x128xf32>
    %36 = arith.addf %34, %35 : vector<8x128xf32>
    %37 = math.tanh %36 : vector<8x128xf32>
    %38 = vector.extract_strided_slice %37 {offsets = [0, 0], sizes = [8, 32], strides = [1, 1]} : vector<8x128xf32> to vector<8x32xf32>
    %cst_17 = arith.constant 5.000000e-01 : f32
    %39 = vector.broadcast %cst_17 : f32 to vector<8x32xf32>
    %40 = arith.mulf %39, %38 : vector<8x32xf32>
    %cst_18 = arith.constant 5.000000e-01 : f32
    %41 = vector.broadcast %cst_18 : f32 to vector<8x32xf32>
    %42 = arith.addf %40, %41 : vector<8x32xf32>
    %43 = vector.extract_strided_slice %37 {offsets = [0, 32], sizes = [8, 32], strides = [1, 1]} : vector<8x128xf32> to vector<8x32xf32>
    %cst_19 = arith.constant 5.000000e-01 : f32
    %44 = vector.broadcast %cst_19 : f32 to vector<8x32xf32>
    %45 = arith.mulf %44, %43 : vector<8x32xf32>
    %cst_20 = arith.constant 5.000000e-01 : f32
    %46 = vector.broadcast %cst_20 : f32 to vector<8x32xf32>
    %47 = arith.addf %45, %46 : vector<8x32xf32>
    %48 = vector.extract_strided_slice %37 {offsets = [0, 64], sizes = [8, 32], strides = [1, 1]} : vector<8x128xf32> to vector<8x32xf32>
    %49 = vector.extract_strided_slice %37 {offsets = [0, 96], sizes = [8, 32], strides = [1, 1]} : vector<8x128xf32> to vector<8x32xf32>
    %cst_21 = arith.constant 5.000000e-01 : f32
    %50 = vector.broadcast %cst_21 : f32 to vector<8x32xf32>
    %51 = arith.mulf %50, %49 : vector<8x32xf32>
    %cst_22 = arith.constant 5.000000e-01 : f32
    %52 = vector.broadcast %cst_22 : f32 to vector<8x32xf32>
    %53 = arith.addf %51, %52 : vector<8x32xf32>
    %54 = arith.mulf %47, %31 : vector<8x32xf32>
    %55 = arith.mulf %42, %48 : vector<8x32xf32>
    %56 = arith.addf %54, %55 : vector<8x32xf32>
    %57 = math.tanh %56 : vector<8x32xf32>
    %58 = arith.mulf %53, %57 : vector<8x32xf32>
    %59 = vector.extract_strided_slice %6 {offsets = [16, 0], sizes = [8, 128], strides = [1, 1]} : vector<64x128xf32> to vector<8x128xf32>
    %cst_23 = arith.constant dense<0.000000e+00> : vector<8x128xf32>
    %60 = tpu.matmul %58, %0, %cst_23 {dimension_numbers = #tpu.dot_dimension_numbers<[1], [0], [0], [1], [0, 0, 1, 1], [], []>} : vector<8x32xf32>, vector<32x128xf32>, vector<8x128xf32> -> vector<8x128xf32>
    %61 = arith.addf %59, %60 : vector<8x128xf32>
    %62 = math.tanh %61 : vector<8x128xf32>
    %63 = vector.extract_strided_slice %62 {offsets = [0, 0], sizes = [8, 32], strides = [1, 1]} : vector<8x128xf32> to vector<8x32xf32>
    %cst_24 = arith.constant 5.000000e-01 : f32
    %64 = vector.broadcast %cst_24 : f32 to vector<8x32xf32>
    %65 = arith.mulf %64, %63 : vector<8x32xf32>
    %cst_25 = arith.constant 5.000000e-01 : f32
    %66 = vector.broadcast %cst_25 : f32 to vector<8x32xf32>
    %67 = arith.addf %65, %66 : vector<8x32xf32>
    %68 = vector.extract_strided_slice %62 {offsets = [0, 32], sizes = [8, 32], strides = [1, 1]} : vector<8x128xf32> to vector<8x32xf32>
    %cst_26 = arith.constant 5.000000e-01 : f32
    %69 = vector.broadcast %cst_26 : f32 to vector<8x32xf32>
    %70 = arith.mulf %69, %68 : vector<8x32xf32>
    %cst_27 = arith.constant 5.000000e-01 : f32
    %71 = vector.broadcast %cst_27 : f32 to vector<8x32xf32>
    %72 = arith.addf %70, %71 : vector<8x32xf32>
    %73 = vector.extract_strided_slice %62 {offsets = [0, 64], sizes = [8, 32], strides = [1, 1]} : vector<8x128xf32> to vector<8x32xf32>
    %74 = vector.extract_strided_slice %62 {offsets = [0, 96], sizes = [8, 32], strides = [1, 1]} : vector<8x128xf32> to vector<8x32xf32>
    %cst_28 = arith.constant 5.000000e-01 : f32
    %75 = vector.broadcast %cst_28 : f32 to vector<8x32xf32>
    %76 = arith.mulf %75, %74 : vector<8x32xf32>
    %cst_29 = arith.constant 5.000000e-01 : f32
    %77 = vector.broadcast %cst_29 : f32 to vector<8x32xf32>
    %78 = arith.addf %76, %77 : vector<8x32xf32>
    %79 = arith.mulf %72, %56 : vector<8x32xf32>
    %80 = arith.mulf %67, %73 : vector<8x32xf32>
    %81 = arith.addf %79, %80 : vector<8x32xf32>
    %82 = math.tanh %81 : vector<8x32xf32>
    %83 = arith.mulf %78, %82 : vector<8x32xf32>
    %84 = vector.extract_strided_slice %6 {offsets = [24, 0], sizes = [8, 128], strides = [1, 1]} : vector<64x128xf32> to vector<8x128xf32>
    %cst_30 = arith.constant dense<0.000000e+00> : vector<8x128xf32>
    %85 = tpu.matmul %83, %0, %cst_30 {dimension_numbers = #tpu.dot_dimension_numbers<[1], [0], [0], [1], [0, 0, 1, 1], [], []>} : vector<8x32xf32>, vector<32x128xf32>, vector<8x128xf32> -> vector<8x128xf32>
    %86 = arith.addf %84, %85 : vector<8x128xf32>
    %87 = math.tanh %86 : vector<8x128xf32>
    %88 = vector.extract_strided_slice %87 {offsets = [0, 0], sizes = [8, 32], strides = [1, 1]} : vector<8x128xf32> to vector<8x32xf32>
    %cst_31 = arith.constant 5.000000e-01 : f32
    %89 = vector.broadcast %cst_31 : f32 to vector<8x32xf32>
    %90 = arith.mulf %89, %88 : vector<8x32xf32>
    %cst_32 = arith.constant 5.000000e-01 : f32
    %91 = vector.broadcast %cst_32 : f32 to vector<8x32xf32>
    %92 = arith.addf %90, %91 : vector<8x32xf32>
    %93 = vector.extract_strided_slice %87 {offsets = [0, 32], sizes = [8, 32], strides = [1, 1]} : vector<8x128xf32> to vector<8x32xf32>
    %cst_33 = arith.constant 5.000000e-01 : f32
    %94 = vector.broadcast %cst_33 : f32 to vector<8x32xf32>
    %95 = arith.mulf %94, %93 : vector<8x32xf32>
    %cst_34 = arith.constant 5.000000e-01 : f32
    %96 = vector.broadcast %cst_34 : f32 to vector<8x32xf32>
    %97 = arith.addf %95, %96 : vector<8x32xf32>
    %98 = vector.extract_strided_slice %87 {offsets = [0, 64], sizes = [8, 32], strides = [1, 1]} : vector<8x128xf32> to vector<8x32xf32>
    %99 = vector.extract_strided_slice %87 {offsets = [0, 96], sizes = [8, 32], strides = [1, 1]} : vector<8x128xf32> to vector<8x32xf32>
    %cst_35 = arith.constant 5.000000e-01 : f32
    %100 = vector.broadcast %cst_35 : f32 to vector<8x32xf32>
    %101 = arith.mulf %100, %99 : vector<8x32xf32>
    %cst_36 = arith.constant 5.000000e-01 : f32
    %102 = vector.broadcast %cst_36 : f32 to vector<8x32xf32>
    %103 = arith.addf %101, %102 : vector<8x32xf32>
    %104 = arith.mulf %97, %81 : vector<8x32xf32>
    %105 = arith.mulf %92, %98 : vector<8x32xf32>
    %106 = arith.addf %104, %105 : vector<8x32xf32>
    %107 = math.tanh %106 : vector<8x32xf32>
    %108 = arith.mulf %103, %107 : vector<8x32xf32>
    %109 = vector.extract_strided_slice %6 {offsets = [32, 0], sizes = [8, 128], strides = [1, 1]} : vector<64x128xf32> to vector<8x128xf32>
    %cst_37 = arith.constant dense<0.000000e+00> : vector<8x128xf32>
    %110 = tpu.matmul %108, %0, %cst_37 {dimension_numbers = #tpu.dot_dimension_numbers<[1], [0], [0], [1], [0, 0, 1, 1], [], []>} : vector<8x32xf32>, vector<32x128xf32>, vector<8x128xf32> -> vector<8x128xf32>
    %111 = arith.addf %109, %110 : vector<8x128xf32>
    %112 = math.tanh %111 : vector<8x128xf32>
    %113 = vector.extract_strided_slice %112 {offsets = [0, 0], sizes = [8, 32], strides = [1, 1]} : vector<8x128xf32> to vector<8x32xf32>
    %cst_38 = arith.constant 5.000000e-01 : f32
    %114 = vector.broadcast %cst_38 : f32 to vector<8x32xf32>
    %115 = arith.mulf %114, %113 : vector<8x32xf32>
    %cst_39 = arith.constant 5.000000e-01 : f32
    %116 = vector.broadcast %cst_39 : f32 to vector<8x32xf32>
    %117 = arith.addf %115, %116 : vector<8x32xf32>
    %118 = vector.extract_strided_slice %112 {offsets = [0, 32], sizes = [8, 32], strides = [1, 1]} : vector<8x128xf32> to vector<8x32xf32>
    %cst_40 = arith.constant 5.000000e-01 : f32
    %119 = vector.broadcast %cst_40 : f32 to vector<8x32xf32>
    %120 = arith.mulf %119, %118 : vector<8x32xf32>
    %cst_41 = arith.constant 5.000000e-01 : f32
    %121 = vector.broadcast %cst_41 : f32 to vector<8x32xf32>
    %122 = arith.addf %120, %121 : vector<8x32xf32>
    %123 = vector.extract_strided_slice %112 {offsets = [0, 64], sizes = [8, 32], strides = [1, 1]} : vector<8x128xf32> to vector<8x32xf32>
    %124 = vector.extract_strided_slice %112 {offsets = [0, 96], sizes = [8, 32], strides = [1, 1]} : vector<8x128xf32> to vector<8x32xf32>
    %cst_42 = arith.constant 5.000000e-01 : f32
    %125 = vector.broadcast %cst_42 : f32 to vector<8x32xf32>
    %126 = arith.mulf %125, %124 : vector<8x32xf32>
    %cst_43 = arith.constant 5.000000e-01 : f32
    %127 = vector.broadcast %cst_43 : f32 to vector<8x32xf32>
    %128 = arith.addf %126, %127 : vector<8x32xf32>
    %129 = arith.mulf %122, %106 : vector<8x32xf32>
    %130 = arith.mulf %117, %123 : vector<8x32xf32>
    %131 = arith.addf %129, %130 : vector<8x32xf32>
    %132 = math.tanh %131 : vector<8x32xf32>
    %133 = arith.mulf %128, %132 : vector<8x32xf32>
    %134 = vector.extract_strided_slice %6 {offsets = [40, 0], sizes = [8, 128], strides = [1, 1]} : vector<64x128xf32> to vector<8x128xf32>
    %cst_44 = arith.constant dense<0.000000e+00> : vector<8x128xf32>
    %135 = tpu.matmul %133, %0, %cst_44 {dimension_numbers = #tpu.dot_dimension_numbers<[1], [0], [0], [1], [0, 0, 1, 1], [], []>} : vector<8x32xf32>, vector<32x128xf32>, vector<8x128xf32> -> vector<8x128xf32>
    %136 = arith.addf %134, %135 : vector<8x128xf32>
    %137 = math.tanh %136 : vector<8x128xf32>
    %138 = vector.extract_strided_slice %137 {offsets = [0, 0], sizes = [8, 32], strides = [1, 1]} : vector<8x128xf32> to vector<8x32xf32>
    %cst_45 = arith.constant 5.000000e-01 : f32
    %139 = vector.broadcast %cst_45 : f32 to vector<8x32xf32>
    %140 = arith.mulf %139, %138 : vector<8x32xf32>
    %cst_46 = arith.constant 5.000000e-01 : f32
    %141 = vector.broadcast %cst_46 : f32 to vector<8x32xf32>
    %142 = arith.addf %140, %141 : vector<8x32xf32>
    %143 = vector.extract_strided_slice %137 {offsets = [0, 32], sizes = [8, 32], strides = [1, 1]} : vector<8x128xf32> to vector<8x32xf32>
    %cst_47 = arith.constant 5.000000e-01 : f32
    %144 = vector.broadcast %cst_47 : f32 to vector<8x32xf32>
    %145 = arith.mulf %144, %143 : vector<8x32xf32>
    %cst_48 = arith.constant 5.000000e-01 : f32
    %146 = vector.broadcast %cst_48 : f32 to vector<8x32xf32>
    %147 = arith.addf %145, %146 : vector<8x32xf32>
    %148 = vector.extract_strided_slice %137 {offsets = [0, 64], sizes = [8, 32], strides = [1, 1]} : vector<8x128xf32> to vector<8x32xf32>
    %149 = vector.extract_strided_slice %137 {offsets = [0, 96], sizes = [8, 32], strides = [1, 1]} : vector<8x128xf32> to vector<8x32xf32>
    %cst_49 = arith.constant 5.000000e-01 : f32
    %150 = vector.broadcast %cst_49 : f32 to vector<8x32xf32>
    %151 = arith.mulf %150, %149 : vector<8x32xf32>
    %cst_50 = arith.constant 5.000000e-01 : f32
    %152 = vector.broadcast %cst_50 : f32 to vector<8x32xf32>
    %153 = arith.addf %151, %152 : vector<8x32xf32>
    %154 = arith.mulf %147, %131 : vector<8x32xf32>
    %155 = arith.mulf %142, %148 : vector<8x32xf32>
    %156 = arith.addf %154, %155 : vector<8x32xf32>
    %157 = math.tanh %156 : vector<8x32xf32>
    %158 = arith.mulf %153, %157 : vector<8x32xf32>
    %159 = vector.extract_strided_slice %6 {offsets = [48, 0], sizes = [8, 128], strides = [1, 1]} : vector<64x128xf32> to vector<8x128xf32>
    %cst_51 = arith.constant dense<0.000000e+00> : vector<8x128xf32>
    %160 = tpu.matmul %158, %0, %cst_51 {dimension_numbers = #tpu.dot_dimension_numbers<[1], [0], [0], [1], [0, 0, 1, 1], [], []>} : vector<8x32xf32>, vector<32x128xf32>, vector<8x128xf32> -> vector<8x128xf32>
    %161 = arith.addf %159, %160 : vector<8x128xf32>
    %162 = math.tanh %161 : vector<8x128xf32>
    %163 = vector.extract_strided_slice %162 {offsets = [0, 0], sizes = [8, 32], strides = [1, 1]} : vector<8x128xf32> to vector<8x32xf32>
    %cst_52 = arith.constant 5.000000e-01 : f32
    %164 = vector.broadcast %cst_52 : f32 to vector<8x32xf32>
    %165 = arith.mulf %164, %163 : vector<8x32xf32>
    %cst_53 = arith.constant 5.000000e-01 : f32
    %166 = vector.broadcast %cst_53 : f32 to vector<8x32xf32>
    %167 = arith.addf %165, %166 : vector<8x32xf32>
    %168 = vector.extract_strided_slice %162 {offsets = [0, 32], sizes = [8, 32], strides = [1, 1]} : vector<8x128xf32> to vector<8x32xf32>
    %cst_54 = arith.constant 5.000000e-01 : f32
    %169 = vector.broadcast %cst_54 : f32 to vector<8x32xf32>
    %170 = arith.mulf %169, %168 : vector<8x32xf32>
    %cst_55 = arith.constant 5.000000e-01 : f32
    %171 = vector.broadcast %cst_55 : f32 to vector<8x32xf32>
    %172 = arith.addf %170, %171 : vector<8x32xf32>
    %173 = vector.extract_strided_slice %162 {offsets = [0, 64], sizes = [8, 32], strides = [1, 1]} : vector<8x128xf32> to vector<8x32xf32>
    %174 = vector.extract_strided_slice %162 {offsets = [0, 96], sizes = [8, 32], strides = [1, 1]} : vector<8x128xf32> to vector<8x32xf32>
    %cst_56 = arith.constant 5.000000e-01 : f32
    %175 = vector.broadcast %cst_56 : f32 to vector<8x32xf32>
    %176 = arith.mulf %175, %174 : vector<8x32xf32>
    %cst_57 = arith.constant 5.000000e-01 : f32
    %177 = vector.broadcast %cst_57 : f32 to vector<8x32xf32>
    %178 = arith.addf %176, %177 : vector<8x32xf32>
    %179 = arith.mulf %172, %156 : vector<8x32xf32>
    %180 = arith.mulf %167, %173 : vector<8x32xf32>
    %181 = arith.addf %179, %180 : vector<8x32xf32>
    %182 = math.tanh %181 : vector<8x32xf32>
    %183 = arith.mulf %178, %182 : vector<8x32xf32>
    %184 = vector.extract_strided_slice %6 {offsets = [56, 0], sizes = [8, 128], strides = [1, 1]} : vector<64x128xf32> to vector<8x128xf32>
    %cst_58 = arith.constant dense<0.000000e+00> : vector<8x128xf32>
    %185 = tpu.matmul %183, %0, %cst_58 {dimension_numbers = #tpu.dot_dimension_numbers<[1], [0], [0], [1], [0, 0, 1, 1], [], []>} : vector<8x32xf32>, vector<32x128xf32>, vector<8x128xf32> -> vector<8x128xf32>
    %186 = arith.addf %184, %185 : vector<8x128xf32>
    %187 = math.tanh %186 : vector<8x128xf32>
    %188 = vector.extract_strided_slice %187 {offsets = [0, 0], sizes = [8, 32], strides = [1, 1]} : vector<8x128xf32> to vector<8x32xf32>
    %cst_59 = arith.constant 5.000000e-01 : f32
    %189 = vector.broadcast %cst_59 : f32 to vector<8x32xf32>
    %190 = arith.mulf %189, %188 : vector<8x32xf32>
    %cst_60 = arith.constant 5.000000e-01 : f32
    %191 = vector.broadcast %cst_60 : f32 to vector<8x32xf32>
    %192 = arith.addf %190, %191 : vector<8x32xf32>
    %193 = vector.extract_strided_slice %187 {offsets = [0, 32], sizes = [8, 32], strides = [1, 1]} : vector<8x128xf32> to vector<8x32xf32>
    %cst_61 = arith.constant 5.000000e-01 : f32
    %194 = vector.broadcast %cst_61 : f32 to vector<8x32xf32>
    %195 = arith.mulf %194, %193 : vector<8x32xf32>
    %cst_62 = arith.constant 5.000000e-01 : f32
    %196 = vector.broadcast %cst_62 : f32 to vector<8x32xf32>
    %197 = arith.addf %195, %196 : vector<8x32xf32>
    %198 = vector.extract_strided_slice %187 {offsets = [0, 64], sizes = [8, 32], strides = [1, 1]} : vector<8x128xf32> to vector<8x32xf32>
    %199 = vector.extract_strided_slice %187 {offsets = [0, 96], sizes = [8, 32], strides = [1, 1]} : vector<8x128xf32> to vector<8x32xf32>
    %cst_63 = arith.constant 5.000000e-01 : f32
    %200 = vector.broadcast %cst_63 : f32 to vector<8x32xf32>
    %201 = arith.mulf %200, %199 : vector<8x32xf32>
    %cst_64 = arith.constant 5.000000e-01 : f32
    %202 = vector.broadcast %cst_64 : f32 to vector<8x32xf32>
    %203 = arith.addf %201, %202 : vector<8x32xf32>
    %204 = arith.mulf %197, %181 : vector<8x32xf32>
    %205 = arith.mulf %192, %198 : vector<8x32xf32>
    %206 = arith.addf %204, %205 : vector<8x32xf32>
    %207 = math.tanh %206 : vector<8x32xf32>
    %208 = arith.mulf %203, %207 : vector<8x32xf32>
    %c0_65 = arith.constant 0 : index
    %c0_66 = arith.constant 0 : index
    %209 = vector.load %arg4[%c0_65, %c0_66] : memref<32x4xf32, #tpu.memory_space<vmem>>, vector<32x4xf32>
    %cst_67 = arith.constant dense<0.000000e+00> : vector<8x4xf32>
    %210 = tpu.matmul %208, %209, %cst_67 {dimension_numbers = #tpu.dot_dimension_numbers<[1], [0], [0], [1], [0, 0, 1, 1], [], []>} : vector<8x32xf32>, vector<32x4xf32>, vector<8x4xf32> -> vector<8x4xf32>
    %c0_68 = arith.constant 0 : index
    %c0_69 = arith.constant 0 : index
    %211 = vector.load %arg5[%c0_68, %c0_69] : memref<1x4xf32, #tpu.memory_space<vmem>>, vector<1x4xf32>
    %212 = vector.broadcast %211 : vector<1x4xf32> to vector<8x4xf32>
    %213 = arith.addf %210, %212 : vector<8x4xf32>
    %214 = arith.negf %213 : vector<8x4xf32>
    %215 = math.exp %214 : vector<8x4xf32>
    %cst_70 = arith.constant 1.000000e+00 : f32
    %216 = vector.broadcast %cst_70 : f32 to vector<8x4xf32>
    %217 = arith.addf %216, %215 : vector<8x4xf32>
    %218 = arith.divf %216, %217 : vector<8x4xf32>
    %c0_71 = arith.constant 0 : index
    %c0_72 = arith.constant 0 : index
    %219 = vector.load %arg6[%c0_71, %c0_72] : memref<8x4xf32, #tpu.memory_space<vmem>>, vector<8x4xf32>
    tpu.vector_store %arg6[%c0_71, %c0_72], %218 {strides = array<i32>} : memref<8x4xf32, #tpu.memory_space<vmem>>, vector<8x4xf32>,
    return
  }
}

</mosaic_0001>

<bundles_post_ra>
// kernel: tpu_custom_call.1
= control target key start
LH: loop header
LB: loop body
LE: loop exit
PB: predicated region body
PF: predicated region fallthrough
CT: control target
= control target key end

     0   :  { %vm69_vm0 = vcmask 1040384   ;;  %vm44_vm1 = vcmask 72704   ;;  %v1335_v0 = vmov 0.0|0.0   ;;  %vm1336_vm2 = vmmov 1   ;;  %s1339_s13 = smov 64   ;;  %s1340_s14 = smov 32   ;;  %s1566_s1 = inlined_call_operand.vmem [shape: f32[9,128], index: 1, kind: input, shape index: {}]   ;;  %s1567_s2 = inlined_call_operand.vmem [shape: f32[32,128], index: 2, kind: input, shape index: {}]   ;;  %s1568_s0 = inlined_call_operand.vmem [shape: f32[64,9], index: 0, kind: input, shape index: {}]   ;;  %s1569_s3 = inlined_call_operand.vmem [shape: f32[1,128], index: 3, kind: input, shape index: {}]   ;;  %s1570_s4 = inlined_call_operand.vmem [shape: f32[32,4], index: 4, kind: input, shape index: {}]   ;;  %s1571_s5 = inlined_call_operand.vmem [shape: f32[1,4], index: 5, kind: input, shape index: {}]   ;;  %s1572_s6 = inlined_call_operand.vmem [shape: f32[8,4], index: 6, kind: output, shape index: {}]  }
   0x1   :  { %1239 = vmatprep.subr.bf16.mxu1 %v1335_v0  ;;  %v35_v1 = vld [vmem:[%s1566_s1] sm:$0xff]  ;;  %v36_v2 = vld [vmem:[%s1566_s1 + $0x8] sm:$0x1]  ;;  %vm1234_vm3 = vmpackc.low %vm69_vm0, %vm1336_vm2  ;;  %vm1337_vm4 = vmmov 0   ;;  %v1338_v7 = vmov 0.0   ;;  %vm178_vm5 = vcmask 261120  }
   0x2   :  { %v1233_v3 = vpack.c.bf16 %v36_v2, %v35_v1  ;;  %v23_v4 = vld [vmem:[%s1567_s2] sm:$0xff]  ;;  %v24_v5 = vld [vmem:[%s1567_s2 + $0x8] sm:$0xff]  ;;  %1142 = vmatprep.mubr.msk.f32.mxu1 %vm1337_vm4, %v1338_v7  ;;  %v25_v9 = vld [vmem:[%s1567_s2 + $0x10] sm:$0xff]  ;;  %vm1037_vm6 = vcmask 31744  }
   0x3   :  { %v27_v6 = vld [vmem:[%s1568_s0] sm:$0xff]  ;;  %v1394_v8 = vpack.c.bf16 %v24_v5, %v23_v4  ;;  %v26_v10 = vld [vmem:[%s1567_s2 + $0x18] sm:$0xff]  ;;  %v28_v11 = vld [vmem:[%s1568_s0 + $0x8] sm:$0xff] }
   0x4   :  { %1122 = vmatprep.mubr.msk.f32.mxu0 %vm44_vm1, %v27_v6  ;;  %1235 = vmatprep.subr.msk.bf16.mxu0 %vm1234_vm3, %v1233_v3  ;;  %v1407_v12 = vpack.c.bf16 %v26_v10, %v25_v9  ;;  %v1428_v13 = vld [vmem:[%s1569_s3] ss:$0 sm:$0xff]  ;;  %v29_v44 = vld [vmem:[%s1568_s0 + $0x10] sm:$0xff]  ;;  %v30_v45 = vld [vmem:[%s1568_s0 + $0x18] sm:$0xff] }
   0x5   :  { %1241 = vmatpush3.bf16.msra.mxu1 %v1394_v8  ;;  %1238 = vmatpush3.bf16.msk.msra.mxu0 %vm1234_vm3, %v1233_v3  ;;  %v31_v46 = vld [vmem:[%s1568_s0 + $0x20] sm:$0xff]  ;;  %v32_v47 = vld [vmem:[%s1568_s0 + $0x28] sm:$0xff]  ;;  %v33_v48 = vld [vmem:[%s1568_s0 + $0x30] sm:$0xff] }
   0x6   :  { %1242 = vmatprep.subr.bf16.mxu1 %v1335_v0  ;;  %1251 = vmatprep.subr.bf16.mxu0 %v1335_v0  ;;  %v34_v49 = vld [vmem:[%s1568_s0 + $0x38] sm:$0xff] }
   0x8   :  { %1123 = vmatmul.mubr.msk.f32.vlgmr.msra.gmra.mrb[0].mxu0 %vm44_vm1, %v28_v11 }
   0x9   :  { %1244 = vmatpush3.bf16.msra.mxu1 %v1407_v12  ;;  %1253 = vmatpush3.bf16.msra.mxu0 %v1394_v8 }
   0xa   :  { %1245 = vmatprep.subr.bf16.mxu1 %v1335_v0  ;;  %1254 = vmatprep.subr.bf16.mxu0 %v1335_v0 }
   0xb   :  { %1125 = vmatprep.mubr.msk.f32.mxu0 %vm44_vm1, %v29_v44 }
   0xc   :  { %1143 = vmatmul.mubr.f32.vlgmr.msra.gmra.mrb[0].mxu1 %v1338_v7  ;;  %1126 = vmatmul.mubr.msk.f32.gmra.mrb[2].mxu0 %vm44_vm1, %v30_v45 }
   0xd   :  { %1247 = vmatpush3.bf16.msra.mxu1 %v1394_v8  ;;  %1153 = vmatprep.mubr.msk.f32.mxu1 %vm1337_vm4, %v1338_v7 }
   0xe   :  { %1248 = vmatprep.subr.bf16.mxu1 %v1335_v0  ;;  %1256 = vmatpush3.bf16.msra.mxu0 %v1407_v12 }
   0xf   :  { %1263 = vmatprep.subr.bf16.mxu0 %v1335_v0  ;;  %1128 = vmatprep.mubr.msk.f32.mxu0 %vm44_vm1, %v31_v46 }
  0x10   :  { %1129 = vmatmul.mubr.msk.f32.gmra.mrb[4].mxu0 %vm44_vm1, %v32_v47 }
  0x11   :  { %1250 = vmatpush3.bf16.msra.mxu1 %v1407_v12  ;;  %1131 = vmatprep.mubr.msk.f32.mxu0 %vm44_vm1, %v33_v48 }
  0x12   :  { %1257 = vmatprep.subr.bf16.mxu1 %v1335_v0 }
  0x14   :  { %1132 = vmatmul.mubr.msk.f32.gmra.mrb[6].mxu0 %vm44_vm1, %v34_v49 }
  0x15   :  { %1164 = vmatprep.mubr.msk.f32.mxu0 %vm1337_vm4, %v1338_v7 }
  0xdb   :  { %v1124_v14 = vpop.f32.mrb[0].mxu0 }
  0xdc   :  { %v139_v15 = vpop.f32.mrb[1].mxu0  ;;  %v145_v32 = vadd.f32 %v1124_v14, %v1428_v13 }
  0xdd   :  { %v140_v16 = vadd.f32 %v1428_v13, %v139_v15 }
  0xdf   :  { %v248_v17 = vpop.f32.mrb[0].mxu1  ;;  %v1127_v53 = vpop.f32.mrb[2].mxu0 }
  0xe0   :  { %v252_v18 = vadd.f32 %v248_v17, %v140_v16  ;;  %v1144_v19 = vpop.f32.mrb[1].mxu1  ;;  %v149_v54 = vpop.f32.mrb[3].mxu0  ;;  %v155_v17 = vadd.f32 %v1127_v53, %v1428_v13 }
  0xe1   :  { %v150_v60 = vadd.f32 %v1428_v13, %v149_v54 }
  0xe2   :  { %1299 = vtanh.f32 %v252_v18 }
  0xe3   :  { %v1473_v55 = vpop.f32.mrb[4].mxu0 }
  0xe4   :  { %v1475_v56 = vpop.f32.mrb[5].mxu0  ;;  %v165_v49 = vadd.f32 %v1473_v55, %v1428_v13 }
  0xe7   :  { %v1477_v57 = vpop.f32.mrb[6].mxu0 }
  0xe8   :  { %v1479_v58 = vpop.f32.mrb[7].mxu0 }
  0xec   :  { %v1300_v20 = vpop.eup %1299 }
  0xed   :  { %258 = vrot.lane.b32.xlu0 %v1300_v20, %s1339_s13  ;;  %v254_v21 = vmul.f32 0.5, %v1300_v20 }
  0xef   :  { %v255_v22 = vadd.f32 0.5, %v254_v21 }
  0xf1   :  { %v256_v25 = vmul.f32 0.0, %v255_v22 }
 0x15f   :  { %v259_v23 = vpop.permute.xlu0 %258 }
 0x160   :  { %v261_v24 = vmul.f32 %v259_v23, %v255_v22 }
 0x162   :  { %263 = vrot.lane.b32.xlu0 %v261_v24, %s1340_s14 }
 0x1d4   :  { %v264_v26 = vpop.permute.xlu0 %263 }
 0x1d5   :  { %v266_v27 = vadd.f32 %v264_v26, %v256_v25 }
 0x1d7   :  { %1301 = vtanh.f32 %v266_v27 }
 0x1e1   :  { %v1302_v28 = vpop.eup %1301 }
 0x1e2   :  { %269 = vrot.lane.b32.xlu1 %v1302_v28, %s1339_s13 }
 0x254   :  { %v270_v29 = vpop.permute.xlu1 %269 }
 0x255   :  { %v272_v30 = vmul.f32 %v270_v29, %v255_v22 }
 0x257   :  { %274 = vrot.lane.b32.xlu1 %v272_v30, %s1340_s14 }
 0x2c9   :  { %v275_v31 = vpop.permute.xlu1 %274 }
 0x2ca   :  { %1154 = vmatmul.mubr.msk.f32.vlgmr.msra.gmra.mrb[2].mxu1 %vm178_vm5, %v275_v31 }
 0x2cb   :  { %1259 = vmatpush3.bf16.msra.mxu1 %v1394_v8  ;;  %1175 = vmatprep.mubr.msk.f32.mxu1 %vm1337_vm4, %v1338_v7 }
 0x2cc   :  { %1260 = vmatprep.subr.bf16.mxu1 %v1335_v0 }
 0x2cf   :  { %1262 = vmatpush3.bf16.msra.mxu1 %v1407_v12 }
 0x2d0   :  { %1269 = vmatprep.subr.bf16.mxu1 %v1335_v0 }
 0x39d   :  { %v344_v33 = vpop.f32.mrb[2].mxu1 }
 0x39e   :  { %v348_v34 = vadd.f32 %v344_v33, %v145_v32  ;;  %v1155_v35 = vpop.f32.mrb[3].mxu1  ;;  %v160_v33 = vadd.f32 %v1428_v13, %v1475_v56 }
 0x3a0   :  { %1303 = vtanh.f32 %v348_v34 }
 0x3aa   :  { %v1304_v36 = vpop.eup %1303 }
 0x3ab   :  { %354 = vrot.lane.b32.xlu0 %v1304_v36, %s1339_s13  ;;  %v350_v37 = vmul.f32 0.5, %v1304_v36 }
 0x3ad   :  { %v351_v38 = vadd.f32 0.5, %v350_v37 }
 0x3af   :  { %v352_v41 = vmul.f32 %v351_v38, %v266_v27 }
 0x41d   :  { %v355_v39 = vpop.permute.xlu0 %354 }
 0x41e   :  { %v357_v40 = vmul.f32 %v355_v39, %v351_v38 }
 0x420   :  { %359 = vrot.lane.b32.xlu1 %v357_v40, %s1340_s14 }
 0x492   :  { %v360_v42 = vpop.permute.xlu1 %359 }
 0x493   :  { %v362_v43 = vadd.f32 %v360_v42, %v352_v41 }
 0x495   :  { %1305 = vtanh.f32 %v362_v43 }
 0x49f   :  { %v1306_v50 = vpop.eup %1305 }
 0x4a0   :  { %365 = vrot.lane.b32.xlu0 %v1306_v50, %s1339_s13 }
 0x512   :  { %v366_v51 = vpop.permute.xlu0 %365 }
 0x513   :  { %v368_v52 = vmul.f32 %v366_v51, %v351_v38 }
 0x515   :  { %370 = vrot.lane.b32.xlu1 %v368_v52, %s1340_s14 }
 0x587   :  { %v371_v59 = vpop.permute.xlu1 %370 }
 0x588   :  { %1165 = vmatmul.mubr.msk.f32.vlgmr.msra.gmra.mrb[8].mxu0 %vm178_vm5, %v371_v59 }
 0x589   :  { %1265 = vmatpush3.bf16.msra.mxu0 %v1394_v8  ;;  %1186 = vmatprep.mubr.msk.f32.mxu0 %vm1337_vm4, %v1338_v7 }
 0x58a   :  { %1266 = vmatprep.subr.bf16.mxu0 %v1335_v0 }
 0x58d   :  { %1268 = vmatpush3.bf16.msra.mxu0 %v1407_v12 }
 0x58e   :  { %1275 = vmatprep.subr.bf16.mxu0 %v1335_v0 }
 0x65b   :  { %v440_v61 = vpop.f32.mrb[8].mxu0 }
 0x65c   :  { %v444_v62 = vadd.f32 %v440_v61, %v150_v60  ;;  %v1166_v63 = vpop.f32.mrb[9].mxu0 }
 0x65e   :  { %1307 = vtanh.f32 %v444_v62 }
 0x668   :  { %v1308_v1 = vpop.eup %1307 }
 0x669   :  { %450 = vrot.lane.b32.xlu0 %v1308_v1, %s1339_s13  ;;  %v446_v2 = vmul.f32 0.5, %v1308_v1 }
 0x66b   :  { %v447_v3 = vadd.f32 0.5, %v446_v2  ;;  %v170_v2 = vadd.f32 %v1428_v13, %v1479_v58 }
 0x66d   :  { %v448_v6 = vmul.f32 %v447_v3, %v362_v43 }
 0x6db   :  { %v451_v4 = vpop.permute.xlu0 %450 }
 0x6dc   :  { %v453_v5 = vmul.f32 %v451_v4, %v447_v3 }
 0x6de   :  { %455 = vrot.lane.b32.xlu1 %v453_v5, %s1340_s14 }
 0x750   :  { %v456_v9 = vpop.permute.xlu1 %455 }
 0x751   :  { %v458_v10 = vadd.f32 %v456_v9, %v448_v6 }
 0x753   :  { %1309 = vtanh.f32 %v458_v10 }
 0x75d   :  { %v1310_v11 = vpop.eup %1309 }
 0x75e   :  { %461 = vrot.lane.b32.xlu0 %v1310_v11, %s1339_s13 }
 0x7d0   :  { %v462_v14 = vpop.permute.xlu0 %461 }
 0x7d1   :  { %v464_v15 = vmul.f32 %v462_v14, %v447_v3 }
 0x7d3   :  { %466 = vrot.lane.b32.xlu1 %v464_v15, %s1340_s14 }
 0x845   :  { %v467_v16 = vpop.permute.xlu1 %466 }
 0x846   :  { %1176 = vmatmul.mubr.msk.f32.vlgmr.msra.gmra.mrb[4].mxu1 %vm178_vm5, %v467_v16 }
 0x847   :  { %1271 = vmatpush3.bf16.msra.mxu1 %v1394_v8  ;;  %1197 = vmatprep.mubr.msk.f32.mxu1 %vm1337_vm4, %v1338_v7 }
 0x848   :  { %1272 = vmatprep.subr.bf16.mxu1 %v1335_v0 }
 0x84b   :  { %1274 = vmatpush3.bf16.msra.mxu1 %v1407_v12 }
 0x84c   :  { %1281 = vmatprep.subr.bf16.mxu1 %v1335_v0 }
 0x919   :  { %v536_v18 = vpop.f32.mrb[4].mxu1 }
 0x91a   :  { %v540_v19 = vadd.f32 %v536_v18, %v155_v17  ;;  %v1177_v20 = vpop.f32.mrb[5].mxu1 }
 0x91b   :  { %v175_v20 = vadd.f32 %v1477_v57, %v1428_v13  ;;  %v945_v13 = vld [vmem:[%s1570_s4] sm:$0xff]  ;;  %v946_v57 = vld [vmem:[%s1570_s4 + $0x8] sm:$0xff] }
 0x91c   :  { %1311 = vtanh.f32 %v540_v19 }
 0x926   :  { %v1312_v21 = vpop.eup %1311 }
 0x927   :  { %546 = vrot.lane.b32.xlu0 %v1312_v21, %s1339_s13  ;;  %v542_v22 = vmul.f32 0.5, %v1312_v21 }
 0x929   :  { %v543_v23 = vadd.f32 0.5, %v542_v22 }
 0x92b   :  { %v544_v26 = vmul.f32 %v543_v23, %v458_v10 }
 0x999   :  { %v547_v24 = vpop.permute.xlu0 %546 }
 0x99a   :  { %v549_v25 = vmul.f32 %v547_v24, %v543_v23 }
 0x99c   :  { %551 = vrot.lane.b32.xlu1 %v549_v25, %s1340_s14 }
 0xa0e   :  { %v552_v27 = vpop.permute.xlu1 %551 }
 0xa0f   :  { %v554_v28 = vadd.f32 %v552_v27, %v544_v26 }
 0xa11   :  { %1313 = vtanh.f32 %v554_v28 }
 0xa1b   :  { %v1314_v29 = vpop.eup %1313 }
 0xa1c   :  { %557 = vrot.lane.b32.xlu0 %v1314_v29, %s1339_s13 }
 0xa8e   :  { %v558_v30 = vpop.permute.xlu0 %557 }
 0xa8f   :  { %v560_v31 = vmul.f32 %v558_v30, %v543_v23 }
 0xa91   :  { %562 = vrot.lane.b32.xlu1 %v560_v31, %s1340_s14 }
 0xb03   :  { %v563_v32 = vpop.permute.xlu1 %562 }
 0xb04   :  { %1187 = vmatmul.mubr.msk.f32.vlgmr.msra.gmra.mrb[10].mxu0 %vm178_vm5, %v563_v32  ;;  %v947_v32 = vld [vmem:[%s1570_s4 + $0x10] sm:$0xff] }
 0xb05   :  { %1277 = vmatpush3.bf16.msra.mxu0 %v1394_v8  ;;  %1208 = vmatprep.mubr.msk.f32.mxu0 %vm1337_vm4, %v1338_v7 }
 0xb06   :  { %1278 = vmatprep.subr.bf16.mxu0 %v1335_v0 }
 0xb09   :  { %1280 = vmatpush3.bf16.msra.mxu0 %v1407_v12 }
 0xb0a   :  { %1287 = vmatprep.subr.bf16.mxu0 %v1335_v0 }
 0xbd7   :  { %v632_v34 = vpop.f32.mrb[10].mxu0 }
 0xbd8   :  { %v636_v35 = vadd.f32 %v632_v34, %v160_v33  ;;  %v1188_v36 = vpop.f32.mrb[11].mxu0  ;;  %v1288_v33 = vpack.c.bf16 %v946_v57, %v945_v13  ;;  %v948_v34 = vld [vmem:[%s1570_s4 + $0x18] sm:$0xff] }
 0xbda   :  { %1315 = vtanh.f32 %v636_v35  ;;  %v1291_v35 = vpack.c.bf16 %v948_v34, %v947_v32 }
 0xbe4   :  { %v1316_v37 = vpop.eup %1315 }
 0xbe5   :  { %642 = vrot.lane.b32.xlu0 %v1316_v37, %s1339_s13  ;;  %v638_v38 = vmul.f32 0.5, %v1316_v37 }
 0xbe7   :  { %v639_v39 = vadd.f32 0.5, %v638_v38 }
 0xbe9   :  { %v640_v42 = vmul.f32 %v639_v39, %v554_v28 }
 0xc57   :  { %v643_v40 = vpop.permute.xlu0 %642 }
 0xc58   :  { %v645_v41 = vmul.f32 %v643_v40, %v639_v39  ;;  %v1060_v40 = vld [vmem:[%s1571_s5] ss:$0 sm:$0xff] }
 0xc5a   :  { %647 = vrot.lane.b32.xlu1 %v645_v41, %s1340_s14 }
 0xccc   :  { %v648_v43 = vpop.permute.xlu1 %647 }
 0xccd   :  { %v650_v44 = vadd.f32 %v648_v43, %v640_v42 }
 0xccf   :  { %1317 = vtanh.f32 %v650_v44 }
 0xcd9   :  { %v1318_v45 = vpop.eup %1317 }
 0xcda   :  { %653 = vrot.lane.b32.xlu0 %v1318_v45, %s1339_s13 }
 0xd4c   :  { %v654_v46 = vpop.permute.xlu0 %653 }
 0xd4d   :  { %v656_v47 = vmul.f32 %v654_v46, %v639_v39 }
 0xd4f   :  { %658 = vrot.lane.b32.xlu1 %v656_v47, %s1340_s14 }
 0xdc1   :  { %v659_v48 = vpop.permute.xlu1 %658 }
 0xdc2   :  { %1198 = vmatmul.mubr.msk.f32.vlgmr.msra.gmra.mrb[6].mxu1 %vm178_vm5, %v659_v48 }
 0xdc3   :  { %1283 = vmatpush3.bf16.msra.mxu1 %v1394_v8  ;;  %1219 = vmatprep.mubr.msk.f32.mxu1 %vm1337_vm4, %v1338_v7 }
 0xdc4   :  { %1284 = vmatprep.subr.bf16.mxu1 %v1335_v0 }
 0xdc7   :  { %1286 = vmatpush3.bf16.msra.mxu1 %v1407_v12 }
 0xe95   :  { %v728_v50 = vpop.f32.mrb[6].mxu1 }
 0xe96   :  { %v732_v51 = vadd.f32 %v728_v50, %v165_v49  ;;  %v1199_v52 = vpop.f32.mrb[7].mxu1 }
 0xe98   :  { %1319 = vtanh.f32 %v732_v51 }
 0xea2   :  { %v1320_v53 = vpop.eup %1319 }
 0xea3   :  { %738 = vrot.lane.b32.xlu0 %v1320_v53, %s1339_s13  ;;  %v734_v54 = vmul.f32 0.5, %v1320_v53 }
 0xea5   :  { %v735_v56 = vadd.f32 0.5, %v734_v54 }
 0xea7   :  { %v736_v60 = vmul.f32 %v735_v56, %v650_v44 }
 0xf15   :  { %v739_v8 = vpop.permute.xlu0 %738 }
 0xf16   :  { %v741_v59 = vmul.f32 %v739_v8, %v735_v56 }
 0xf18   :  { %743 = vrot.lane.b32.xlu1 %v741_v59, %s1340_s14 }
 0xf8a   :  { %v744_v61 = vpop.permute.xlu1 %743 }
 0xf8b   :  { %v746_v62 = vadd.f32 %v744_v61, %v736_v60 }
 0xf8d   :  { %1321 = vtanh.f32 %v746_v62 }
 0xf97   :  { %v1322_v12 = vpop.eup %1321 }
 0xf98   :  { %749 = vrot.lane.b32.xlu0 %v1322_v12, %s1339_s13 }
0x100a   :  { %v750_v55 = vpop.permute.xlu0 %749 }
0x100b   :  { %v752_v63 = vmul.f32 %v750_v55, %v735_v56 }
0x100d   :  { %754 = vrot.lane.b32.xlu1 %v752_v63, %s1340_s14 }
0x107f   :  { %v755_v1 = vpop.permute.xlu1 %754 }
0x1080   :  { %1209 = vmatmul.mubr.msk.f32.vlgmr.msra.gmra.mrb[12].mxu0 %vm178_vm5, %v755_v1 }
0x1081   :  { %1230 = vmatprep.mubr.msk.f32.mxu0 %vm1337_vm4, %v1338_v7  ;;  %1289 = vmatpush3.bf16.msra.mxu0 %v1288_v33 }
0x1082   :  { %1290 = vmatprep.subr.bf16.mxu0 %v1335_v0 }
0x1085   :  { %1292 = vmatpush3.bf16.msra.mxu0 %v1291_v35 }
0x1153   :  { %v824_v3 = vpop.f32.mrb[12].mxu0 }
0x1154   :  { %v828_v4 = vadd.f32 %v824_v3, %v170_v2  ;;  %v1210_v5 = vpop.f32.mrb[13].mxu0 }
0x1156   :  { %1323 = vtanh.f32 %v828_v4 }
0x1160   :  { %v1324_v6 = vpop.eup %1323 }
0x1161   :  { %834 = vrot.lane.b32.xlu0 %v1324_v6, %s1339_s13  ;;  %v830_v9 = vmul.f32 0.5, %v1324_v6 }
0x1163   :  { %v831_v10 = vadd.f32 0.5, %v830_v9 }
0x1165   :  { %v832_v15 = vmul.f32 %v831_v10, %v746_v62 }
0x11d3   :  { %v835_v11 = vpop.permute.xlu0 %834 }
0x11d4   :  { %v837_v14 = vmul.f32 %v835_v11, %v831_v10 }
0x11d6   :  { %839 = vrot.lane.b32.xlu1 %v837_v14, %s1340_s14 }
0x1248   :  { %v840_v16 = vpop.permute.xlu1 %839 }
0x1249   :  { %v842_v17 = vadd.f32 %v840_v16, %v832_v15 }
0x124b   :  { %1325 = vtanh.f32 %v842_v17 }
0x1255   :  { %v1326_v7 = vpop.eup %1325 }
0x1256   :  { %845 = vrot.lane.b32.xlu0 %v1326_v7, %s1339_s13 }
0x12c8   :  { %v846_v58 = vpop.permute.xlu0 %845 }
0x12c9   :  { %v848_v18 = vmul.f32 %v846_v58, %v831_v10 }
0x12cb   :  { %850 = vrot.lane.b32.xlu1 %v848_v18, %s1340_s14 }
0x133d   :  { %v851_v19 = vpop.permute.xlu1 %850 }
0x133e   :  { %1220 = vmatmul.mubr.msk.f32.vlgmr.msra.gmra.mrb[8].mxu1 %vm178_vm5, %v851_v19 }
0x1411   :  { %v920_v21 = vpop.f32.mrb[8].mxu1 }
0x1412   :  { %v924_v22 = vadd.f32 %v920_v21, %v175_v20  ;;  %v1221_v23 = vpop.f32.mrb[9].mxu1 }
0x1414   :  { %1327 = vtanh.f32 %v924_v22 }
0x141e   :  { %v1328_v24 = vpop.eup %1327 }
0x141f   :  { %930 = vrot.lane.b32.xlu0 %v1328_v24, %s1339_s13  ;;  %v926_v25 = vmul.f32 0.5, %v1328_v24 }
0x1421   :  { %v927_v26 = vadd.f32 0.5, %v926_v25 }
0x1423   :  { %v928_v29 = vmul.f32 %v927_v26, %v842_v17 }
0x1491   :  { %v931_v27 = vpop.permute.xlu0 %930 }
0x1492   :  { %v933_v28 = vmul.f32 %v931_v27, %v927_v26 }
0x1494   :  { %935 = vrot.lane.b32.xlu1 %v933_v28, %s1340_s14 }
0x1506   :  { %v936_v30 = vpop.permute.xlu1 %935 }
0x1507   :  { %v938_v31 = vadd.f32 %v936_v30, %v928_v29 }
0x1509   :  { %1329 = vtanh.f32 %v938_v31 }
0x1513   :  { %v1330_v36 = vpop.eup %1329 }
0x1514   :  { %941 = vrot.lane.b32.xlu0 %v1330_v36, %s1339_s13 }
0x1586   :  { %v942_v37 = vpop.permute.xlu0 %941 }
0x1587   :  { %v944_v38 = vmul.f32 %v942_v37, %v927_v26 }
0x1589   :  { %957 = vrot.lane.b32.xlu1 %v944_v38, %s1340_s14 }
0x15fb   :  { %v958_v39 = vpop.permute.xlu1 %957 }
0x15fc   :  { %1231 = vmatmul.mubr.msk.f32.vlgmr.msra.gmra.mrb[14].mxu0 %vm178_vm5, %v958_v39 }
0x16cf   :  { %v1027_v41 = vpop.f32.mrb[14].mxu0 }
0x16d0   :  { %v1028_v42 = vadd.f32 %v1060_v40, %v1027_v41  ;;  %v1232_v43 = vpop.f32.mrb[15].mxu0 }
0x16d2   :  { %v1062_v44 = vmul.f32 -1.442695, %v1028_v42 }
0x16d4   :  { %1331 = vpow2.f32 %v1062_v44 }
0x16de   :  { %v1332_v0 = vpop.eup %1331 }
0x16df   :  { %v1034_v45 = vadd.f32 1.0, %v1332_v0 }
0x16e1   :  { %1333 = vrcp.f32 %v1034_v45 }
0x16eb   :  { %v1334_v46 = vpop.eup %1333 }
0x16ec   :  { %1038 = vst.msk [vmem:[%s1572_s6] sm:$0xff] %vm1037_vm6, %v1334_v46 }

</bundles_post_ra>
